<compile_context>
chip_gen: v5e
topology: v5e:2x2
jax: 0.10.0
libtpu: 0.0.40
codegen_flags: <defaults>
</compile_context>

<pallas_src>
import functools

import jax
import jax.numpy as jnp
from jax.experimental import pallas as pl
from jax.experimental.pallas import tpu as pltpu


_NEG_BIG = -1e30


def _round_up(x, m):
    return ((x + m - 1) // m) * m


# ------------------------------ kernels ------------------------------

def _softmax_over_b(scores, valid_b):
    """Softmax over the last axis (batch) of (T_tile, B_pad) f32 scores.

    Padded batch columns (index >= valid_b) are excluded via a -1e30 mask.
    """
    b_pad = scores.shape[-1]
    if valid_b != b_pad:
        col = jax.lax.broadcasted_iota(jnp.int32, scores.shape, scores.ndim - 1)
        scores = jnp.where(col < valid_b, scores, _NEG_BIG)
    m = jnp.max(scores, axis=-1, keepdims=True)
    e = jnp.exp(scores - m)
    return e / jnp.sum(e, axis=-1, keepdims=True)          # exact normalization


def _dot_kernel(eo_ref, hid_ref, out_ref, *, valid_b):
    # eo_ref:  (T_tile*B_pad, H_pad) f32   hid_ref: (B_pad, H_pad) f32
    b_pad, h_pad = hid_ref.shape
    t_tile = out_ref.shape[0]
    e3 = eo_ref[...].reshape(t_tile, b_pad, h_pad)          # free (B_pad % 8 == 0)
    scores = jnp.sum(e3 * hid_ref[...][None], axis=-1)      # VPU mul + lane reduce
    out_ref[...] = _softmax_over_b(scores, valid_b)


def _general_kernel(eo_ref, hid_ref, wt_ref, b_ref, out_ref, *, valid_b):
    # energy = encoder_output @ W.T + b  as one dense (rows, H) @ (H, H) matmul.
    b_pad, h_pad = hid_ref.shape
    t_tile = out_ref.shape[0]
    energy = jnp.dot(eo_ref[...].astype(jnp.bfloat16), wt_ref[...],
                     preferred_element_type=jnp.float32) + b_ref[...]
    e3 = energy.reshape(t_tile, b_pad, h_pad)
    scores = jnp.sum(e3 * hid_ref[...][None], axis=-1)       # contract with hidden[b]
    out_ref[...] = _softmax_over_b(scores, valid_b)


def _concat_kernel(eo_ref, hid_ref, w1t_ref, w2t_ref, b_ref, v_ref, out_ref, *,
                   valid_b):
    # energy = tanh(hidden @ W1.T + encoder_output @ W2.T + b); score = <v, energy>.
    b_pad, h_pad = hid_ref.shape
    t_tile = out_ref.shape[0]
    # hidden half: tiny (B_pad, H_pad) matmul, ~1/T_tile of the main work.
    hproj = jnp.dot(hid_ref[...].astype(jnp.bfloat16), w1t_ref[...],
                    preferred_element_type=jnp.float32)
    eproj = jnp.dot(eo_ref[...].astype(jnp.bfloat16), w2t_ref[...],
                    preferred_element_type=jnp.float32)
    e3 = eproj.reshape(t_tile, b_pad, h_pad)
    energy = jnp.tanh(e3 + hproj[None] + b_ref[...][None])   # EUP tanh, f32
    scores = jnp.sum(v_ref[...][None] * energy, axis=-1)
    out_ref[...] = _softmax_over_b(scores, valid_b)


# ------------------------------ wrapper ------------------------------

def attn_forward(method, hidden, encoder_outputs, params, *, t_tile=None):
    """Pallas implementation of Attn.forward.

    hidden:          (1, B, H)
    encoder_outputs: (T, B, H)
    returns:         (T, 1, B) = F.softmax(score(hidden, encoder_outputs), dim=1).unsqueeze(1)
    """
    if method not in ("dot", "general", "concat"):
        raise ValueError(method, "is not an appropriate attention method.")
    T, B, H = encoder_outputs.shape
    assert hidden.shape == (1, B, H)
    f32, bf16 = jnp.float32, jnp.bfloat16

    # --- padded / tiled geometry -------------------------------------------
    B_pad = _round_up(B, 8)            # sublane axis of (T, B, H) blocks
    H_pad = _round_up(H, 128)          # lane axis
    if t_tile is None:
        # Largest T tile (multiple of 8) whose f32 encoder-output block <= ~4 MiB.
        row_bytes = B_pad * H_pad * 4
        max_rows = max(8, ((4 << 20) // row_bytes) // 8 * 8)
        t_tile = min(_round_up(T, 8), max_rows)
    else:
        t_tile = _round_up(t_tile, 8)
    T_pad = _round_up(T, t_tile)
    grid_t = T_pad // t_tile

    # --- pad activations (zero padding is exact; padded b-cols masked later) ---
    eo = encoder_outputs.astype(f32)
    if (T_pad, B_pad, H_pad) != (T, B, H):
        eo = jnp.pad(eo, ((0, T_pad - T), (0, B_pad - B), (0, H_pad - H)))
    eo2 = eo.reshape(T_pad * B_pad, H_pad)          # contiguous reshape, no copy
    hid = hidden[0].astype(f32)
    if (B_pad, H_pad) != (B, H):
        hid = jnp.pad(hid, ((0, B_pad - B), (0, H_pad - H)))

    # --- specs ---------------------------------------------------------------
    eo_spec = pl.BlockSpec((t_tile * B_pad, H_pad), lambda t: (t, 0))
    out_spec = pl.BlockSpec((t_tile, B_pad), lambda t: (t, 0))
    out_shape = jax.ShapeDtypeStruct((T_pad, B_pad), f32)

    def resident(shape):                 # weights / hidden: same block every step
        nd = len(shape)
        return pl.BlockSpec(shape, lambda t, _nd=nd: (0,) * _nd)

    cparams = pltpu.CompilerParams(
        dimension_semantics=("parallel",),      # T rows independent; 2 TCs on v7x
        vmem_limit_bytes=32 << 20,              # within scoped limits on v5e/v6e/v7x
    )

    eo_bytes = T_pad * B_pad * H_pad * 4
    hid_bytes = B_pad * H_pad * 4
    out_bytes = T_pad * B_pad * 4

    if method == "dot":
        kernel = functools.partial(_dot_kernel, valid_b=B)
        cost = pl.CostEstimate(
            flops=2 * T_pad * B_pad * H_pad,
            transcendentals=T_pad * B_pad,
            bytes_accessed=eo_bytes + hid_bytes + out_bytes)
        out = pl.pallas_call(
            kernel, out_shape=out_shape, grid=(grid_t,),
            in_specs=[eo_spec, resident((B_pad, H_pad))],
            out_specs=out_spec, compiler_params=cparams, cost_estimate=cost,
        )(eo2, hid)

    elif method == "general":
        # Params-only prep: O(H^2), hoistable / constant-folded under jit.
        wt = jnp.pad(params["w_attn"].T.astype(f32),
                     ((0, H_pad - H), (0, H_pad - H))).astype(bf16)
        b_row = jnp.pad(params["b_attn"].astype(f32), (0, H_pad - H))[None, :]
        kernel = functools.partial(_general_kernel, valid_b=B)
        cost = pl.CostEstimate(
            flops=2 * T_pad * B_pad * H_pad * H_pad + 2 * T_pad * B_pad * H_pad,
            transcendentals=T_pad * B_pad,
            bytes_accessed=eo_bytes + hid_bytes + wt.size * 2 + b_row.size * 4
            + out_bytes)
        out = pl.pallas_call(
            kernel, out_shape=out_shape, grid=(grid_t,),
            in_specs=[eo_spec, resident((B_pad, H_pad)),
                      resident((H_pad, H_pad)), resident((1, H_pad))],
            out_specs=out_spec, compiler_params=cparams, cost_estimate=cost,
        )(eo2, hid, wt, b_row)

    else:  # concat
        w_cat = params["w_attn"].astype(f32)                  # (H, 2H)
        w1t = jnp.pad(w_cat[:, :H].T, ((0, H_pad - H), (0, H_pad - H))).astype(bf16)
        w2t = jnp.pad(w_cat[:, H:].T, ((0, H_pad - H), (0, H_pad - H))).astype(bf16)
        b_row = jnp.pad(params["b_attn"].astype(f32), (0, H_pad - H))[None, :]
        v_row = jnp.pad(params["v"].astype(f32), (0, H_pad - H))[None, :]
        kernel = functools.partial(_concat_kernel, valid_b=B)
        cost = pl.CostEstimate(
            flops=(2 * T_pad * B_pad * H_pad * H_pad
                   + 2 * grid_t * B_pad * H_pad * H_pad
                   + 2 * T_pad * B_pad * H_pad),
            transcendentals=T_pad * B_pad * H_pad + T_pad * B_pad,
            bytes_accessed=eo_bytes + hid_bytes + w1t.size * 2 + w2t.size * 2
            + b_row.size * 4 + v_row.size * 4 + out_bytes)
        out = pl.pallas_call(
            kernel, out_shape=out_shape, grid=(grid_t,),
            in_specs=[eo_spec, resident((B_pad, H_pad)),
                      resident((H_pad, H_pad)), resident((H_pad, H_pad)),
                      resident((1, H_pad)), resident((1, H_pad))],
            out_specs=out_spec, compiler_params=cparams, cost_estimate=cost,
        )(eo2, hid, w1t, w2t, b_row, v_row)

    return out[:T, :B][:, None, :]                           # (T, 1, B)


# ---------------- pure-JAX reference (mirrors the PyTorch module) ----------------

def init_params(key, hidden_size, method):
    H = hidden_size
    params = {}
    if method == "general":
        k1, k2 = jax.random.split(key, 2)
        s = 1.0 / jnp.sqrt(jnp.float32(H))
        params["w_attn"] = jax.random.uniform(k1, (H, H), jnp.float32, -s, s)
        params["b_attn"] = jax.random.uniform(k2, (H,), jnp.float32, -s, s)
    elif method == "concat":
        k1, k2, k3 = jax.random.split(key, 3)
        s = 1.0 / jnp.sqrt(jnp.float32(2 * H))
        params["w_attn"] = jax.random.uniform(k1, (H, 2 * H), jnp.float32, -s, s)
        params["b_attn"] = jax.random.uniform(k2, (H,), jnp.float32, -s, s)
        params["v"] = jax.random.normal(k3, (H,), jnp.float32)
    return params


def attn_reference(method, hidden, encoder_outputs, params):
    if method == "dot":
        energies = jnp.sum(hidden * encoder_outputs, axis=2)
    elif method == "general":
        energy = encoder_outputs @ params["w_attn"].T + params["b_attn"]
        energies = jnp.sum(hidden * energy, axis=2)
    else:  # concat
        T = encoder_outputs.shape[0]
        hid_exp = jnp.broadcast_to(hidden, (T,) + hidden.shape[1:])
        cat = jnp.concatenate([hid_exp, encoder_outputs], axis=2)
        energy = jnp.tanh(cat @ params["w_attn"].T + params["b_attn"])
        energies = jnp.sum(params["v"] * energy, axis=2)
    return jax.nn.softmax(energies, axis=1)[:, None, :]


if __name__ == "__main__":
    all_ok = True
    # Second config has unaligned T/B/H and a forced small T tile -> exercises
    # padding, batch-column masking and the multi-step grid over T.
    for (T, B, H, forced_tile) in [(8, 2, 32, None), (20, 3, 48, 8)]:
        key = jax.random.PRNGKey(0)
        k_h, k_e, k_p = jax.random.split(key, 3)
        hidden = jax.random.normal(k_h, (1, B, H), jnp.float32)
        encoder_outputs = jax.random.normal(k_e, (T, B, H), jnp.float32)
        for method in ("dot", "general", "concat"):
            params = init_params(k_p, H, method)
            out = attn_forward(method, hidden, encoder_outputs, params,
                               t_tile=forced_tile)
            jax.block_until_ready(out)
            ref = attn_reference(method, hidden, encoder_outputs, params)
            assert out.shape == (T, 1, B)
            if not jnp.allclose(out, ref, atol=3e-2, rtol=3e-2):
                all_ok = False
                err = float(jnp.max(jnp.abs(out - ref)))
                print(f"mismatch T={T} B={B} H={H} method={method}: "
                      f"max abs err = {err}")
    if not all_ok:
        raise RuntimeError("Pallas Attn output does not match JAX reference")
    print("KERNEL_OK")
</pallas_src>

<mosaic_0001>
module attributes {stable_mosaic.version = 11 : i64} {
  func.func @_dot_kernel(%arg0: i32, %arg1: memref<64x128xf32, #tpu.memory_space<vmem>>, %arg2: memref<8x128xf32, #tpu.memory_space<vmem>>, %arg3: memref<8x8xf32, #tpu.memory_space<vmem>>) attributes {dimension_semantics = [#tpu.dimension_semantics<parallel>], iteration_bounds = array<i64: 1>, scalar_prefetch = 0 : i64, scratch_operands = 0 : i64, tpu.core_type = #tpu.core_type<tc>, window_params = [{transform_indices = @transform_0, window_bounds = array<i64: 64, 128>}, {pipeline_mode = #tpu.pipeline_mode<synchronous>, transform_indices = @transform_1, window_bounds = array<i64: 8, 128>}, {transform_indices = @transform_2, window_bounds = array<i64: 8, 8>}]} {
    %c0 = arith.constant 0 : index
    %c0_0 = arith.constant 0 : index
    %0 = vector.load %arg1[%c0, %c0_0] : memref<64x128xf32, #tpu.memory_space<vmem>>, vector<64x128xf32>
    %1 = vector.shape_cast %0 : vector<64x128xf32> to vector<8x8x128xf32>
    %c0_1 = arith.constant 0 : index
    %c0_2 = arith.constant 0 : index
    %2 = vector.load %arg2[%c0_1, %c0_2] : memref<8x128xf32, #tpu.memory_space<vmem>>, vector<8x128xf32>
    %3 = vector.shape_cast %2 : vector<8x128xf32> to vector<1x8x128xf32>
    %4 = vector.broadcast %3 : vector<1x8x128xf32> to vector<8x8x128xf32>
    %5 = arith.mulf %1, %4 : vector<8x8x128xf32>
    %cst = arith.constant dense<0.000000e+00> : vector<8x8xf32>
    %6 = vector.multi_reduction <add>, %5, %cst [2] : vector<8x8x128xf32> to vector<8x8xf32>
    %7 = tpu.iota {dimensions = array<i32: 1>} : vector<8x8xi32>
    %c2_i32 = arith.constant 2 : i32
    %8 = vector.broadcast %c2_i32 : i32 to vector<8x8xi32>
    %9 = arith.cmpi slt, %7, %8 : vector<8x8xi32>
    %cst_3 = arith.constant -1.000000e+30 : f32
    %10 = vector.broadcast %cst_3 : f32 to vector<8x8xf32>
    %11 = arith.select %9, %6, %10 : vector<8x8xi1>, vector<8x8xf32>
    %cst_4 = arith.constant dense<0xFF800000> : vector<8xf32>
    %12 = vector.multi_reduction <maximumf>, %11, %cst_4 [1] : vector<8x8xf32> to vector<8xf32>
    %13 = vector.shape_cast %12 : vector<8xf32> to vector<8x1xf32>
    %14 = vector.broadcast %13 : vector<8x1xf32> to vector<8x8xf32>
    %15 = arith.subf %11, %14 : vector<8x8xf32>
    %16 = math.exp %15 : vector<8x8xf32>
    %cst_5 = arith.constant dense<0.000000e+00> : vector<8xf32>
    %17 = vector.multi_reduction <add>, %16, %cst_5 [1] : vector<8x8xf32> to vector<8xf32>
    %18 = vector.shape_cast %17 : vector<8xf32> to vector<8x1xf32>
    %19 = vector.broadcast %18 : vector<8x1xf32> to vector<8x8xf32>
    %20 = arith.divf %16, %19 : vector<8x8xf32>
    %c0_6 = arith.constant 0 : index
    %c0_7 = arith.constant 0 : index
    %21 = vector.load %arg3[%c0_6, %c0_7] : memref<8x8xf32, #tpu.memory_space<vmem>>, vector<8x8xf32>
    tpu.vector_store %arg3[%c0_6, %c0_7], %20 {strides = array<i32>} : memref<8x8xf32, #tpu.memory_space<vmem>>, vector<8x8xf32>,
    return
  }
  func.func @transform_0(%arg0: i32) -> (i32, i32) {
    %c0_i32 = arith.constant 0 : i32
    %c0_i32_0 = arith.constant 0 : i32
    return %arg0, %c0_i32 : i32, i32
  }
  func.func @transform_1(%arg0: i32) -> (i32, i32) {
    %c0_i32 = arith.constant 0 : i32
    %c0_i32_0 = arith.constant 0 : i32
    %c0_i32_1 = arith.constant 0 : i32
    return %c0_i32, %c0_i32_0 : i32, i32
  }
  func.func @transform_2(%arg0: i32) -> (i32, i32) {
    %c0_i32 = arith.constant 0 : i32
    %c0_i32_0 = arith.constant 0 : i32
    return %arg0, %c0_i32 : i32, i32
  }
}

</mosaic_0001>

<bundles_post_ra>
// kernel: tpu_custom_call.1
= control target key start
LH: loop header
LB: loop body
LE: loop exit
PB: predicated region body
PF: predicated region fallthrough
CT: control target
= control target key end

     0   :  { %7 = vsyncpa [#allocation3], 0  ;;  %s273_s0 = inlined_call_operand.hbm [shape: f32[64,128], index: 0, kind: input, shape index: {}]   ;;  %s274_s1 = inlined_call_operand.hbm [shape: f32[8,128], index: 1, kind: input, shape index: {}]   ;;  %s275_s2 = inlined_call_operand.hbm [shape: f32[8,8], index: 2, kind: output, shape index: {}]  }
   0x1   :  { %8 = vsyncpa [#allocation6], 0 }
   0x2   :  { %9 = vsyncpa [#allocation4], 0  ;;  %s14_s11 = sshll.u32 %s273_s0, 4  ;;  %s241_s12 = smov [#allocation2]   ;;  %s15_s11 = int_to_ptr.hbm [resolvable:$true] %s14_s11 }
   0x3   :  { %s16_s13 = sshll.u32 %s241_s12, 4  ;;  %s28_s16 = sshll.u32 %s274_s1, 4  ;;  %s17_s13 = int_to_ptr.vmem [resolvable:$true] %s16_s13  ;;  %s29_s16 = int_to_ptr.hbm [resolvable:$true] %s28_s16 }
   0x4   :  { %s242_s17 = smov 128   ;;  %s243_s18 = smov 8  }
   0x5   :  { %22 = dma.hbm_to_vmem [thread:$0]  %s15_s11, 1024, %s17_s13, [#allocation3], %s242_s17, %s242_s17, %s243_s18  }
   0x6   :  { %s244_s19 = smov [#allocation5]  }
   0x7   :  { %s30_s20 = sshll.u32 %s244_s19, 4  ;;  %s31_s20 = int_to_ptr.vmem [resolvable:$true] %s30_s20 }
   0x8   :  { %33 = dma.hbm_to_vmem [thread:$0]  %s29_s16, 128, %s31_s20, [#allocation6]  }
   0x9   :  { %235 = dma.done.wait [#allocation3], 1024  }
   0xa   :  { %236 = vsyncadd [#allocation3], 4294966272 }
   0xb   :  { %237 = dma.done.wait [#allocation6], 128  }
   0xc   :  { %238 = vsyncadd [#allocation6], 4294967168  ;;  %v42_v0 = vld [vmem:[#allocation2] sm:$0xff]  ;;  %v44_v2 = vld [vmem:[#allocation2 + $0x10] sm:$0xff]  ;;  %v75_v19 = vlaneseq  ;;  %vm94_vm0 = vcmask 1041409   ;;  %vm96_vm1 = vcmask 1042434  }
   0xd   :  { %v50_v1 = vld [vmem:[#allocation5] sm:$0xff]  ;;  %v43_v7 = vld [vmem:[#allocation2 + $0x8] sm:$0xff]  ;;  %v45_v8 = vld [vmem:[#allocation2 + $0x18] sm:$0xff]  ;;  %vm98_vm2 = vcmask 1043459   ;;  %vm100_vm3 = vcmask 1044484   ;;  %vm102_vm4 = vcmask 1045509  }
   0xe   :  { %v51_v3 = vmul.f32 %v50_v1, %v42_v0  ;;  %v53_v4 = vmul.f32 %v50_v1, %v44_v2  ;;  %v46_v5 = vld [vmem:[#allocation2 + $0x20] sm:$0xff]  ;;  %v47_v9 = vld [vmem:[#allocation2 + $0x28] sm:$0xff]  ;;  %v52_v10 = vmul.f32 %v50_v1, %v43_v7  ;;  %v54_v11 = vmul.f32 %v50_v1, %v45_v8  ;;  %v48_v13 = vld [vmem:[#allocation2 + $0x30] sm:$0xff]  ;;  %s245_s0 = smov [#allocation7]   ;;  %s143_s23 = sshll.u32 %s275_s2, 4  ;;  %s144_s23 = int_to_ptr.hbm [resolvable:$true] %s143_s23 }
   0xf   :  { %v55_v6 = vmul.f32 %v50_v1, %v46_v5  ;;  %v56_v12 = vmul.f32 %v50_v1, %v47_v9  ;;  %v49_v14 = vld [vmem:[#allocation2 + $0x38] sm:$0xff]  ;;  %v57_v15 = vmul.f32 %v50_v1, %v48_v13  ;;  %v76_v21 = vand.u32 127, %v75_v19  ;;  %s141_s1 = sshll.u32 %s245_s0, 4  ;;  %s142_s1 = int_to_ptr.vmem [resolvable:$true] %s141_s1 }
  0x10   :  { %59 = vadd.xlane.f32.xlu0 %v51_v3  ;;  %63 = vadd.xlane.f32.xlu1 %v53_v4  ;;  %v58_v16 = vmul.f32 %v50_v1, %v49_v14  ;;  %vm104_vm5 = vcmask 1046534   ;;  %vm106_vm6 = vcmask 1047559   ;;  %vm110_vm8 = vcmask 64512  }
  0x11   :  { %67 = vadd.xlane.f32.xlu2 %v55_v6  ;;  %vm77_vm7 = vcmp.lt.s32.totalorder %v76_v21, 2 }
  0x18   :  { %61 = vadd.xlane.f32.xlu0 %v52_v10  ;;  %65 = vadd.xlane.f32.xlu1 %v54_v11 }
  0x19   :  { %69 = vadd.xlane.f32.xlu2 %v56_v12 }
  0x20   :  { %71 = vadd.xlane.f32.xlu0 %v57_v15  ;;  %73 = vadd.xlane.f32.xlu1 %v58_v16 }
  0x83   :  { %v60_v17 = vpop.xlane.xlu0 %59  ;;  %v64_v18 = vpop.xlane.xlu1 %63 }
  0x84   :  { %v68_v20 = vpop.xlane.xlu2 %67  ;;  %v86_v24 = vperm.slane %v60_v17, %v76_v21  ;;  %v88_v27 = vperm.slane %v64_v18, %v76_v21 }
  0x85   :  { %v90_v31 = vperm.slane %v68_v20, %v76_v21 }
  0x8b   :  { %v62_v22 = vpop.xlane.xlu0 %61  ;;  %v66_v23 = vpop.xlane.xlu1 %65 }
  0x8c   :  { %v87_v25 = vperm.slane %v62_v22, %v76_v21  ;;  %v89_v26 = vperm.slane %v66_v23, %v76_v21  ;;  %v70_v29 = vpop.xlane.xlu2 %69 }
  0x8d   :  { %v91_v33 = vperm.slane %v70_v29, %v76_v21 }
  0x8e   :  { %v95_v28 = vsel %vm94_vm0, %v87_v25, %v86_v24 }
  0x8f   :  { %v97_v30 = vsel %vm96_vm1, %v88_v27, %v95_v28 }
  0x90   :  { %v99_v32 = vsel %vm98_vm2, %v89_v26, %v97_v30 }
  0x91   :  { %v101_v34 = vsel %vm100_vm3, %v90_v31, %v99_v32 }
  0x92   :  { %v103_v39 = vsel %vm102_vm4, %v91_v33, %v101_v34 }
  0x93   :  { %v72_v35 = vpop.xlane.xlu0 %71  ;;  %v74_v36 = vpop.xlane.xlu1 %73 }
  0x94   :  { %v92_v37 = vperm.slane %v72_v35, %v76_v21  ;;  %v93_v38 = vperm.slane %v74_v36, %v76_v21 }
  0x96   :  { %v105_v40 = vsel %vm104_vm5, %v92_v37, %v103_v39 }
  0x97   :  { %v107_v41 = vsel %vm106_vm6, %v93_v38, %v105_v40 }
  0x98   :  { %v109_v42 = vsel %vm77_vm7, %v107_v41, -1e+30 }
  0x99   :  { %v111_v43 = vsel %vm110_vm8, %v109_v42, -inf }
  0x9a   :  { %112 = vmax.xlane.f32.xlu2 %v111_v43 }
 0x10d   :  { %v113_v44 = vpop.xlane.xlu2 %112 }
 0x10e   :  { %v114_v45 = vsub.f32 %v109_v42, %v113_v44 }
 0x110   :  { %v115_v46 = vmul.f32 1.442695, %v114_v45 }
 0x112   :  { %159 = vpow2.f32 %v115_v46 }
 0x118   :  { %v160_v47 = vpop.eup %159 }
 0x119   :  { %v117_v48 = vsel %vm110_vm8, %v160_v47, 0.0 }
 0x11a   :  { %118 = vadd.xlane.f32.xlu0 %v117_v48 }
 0x18d   :  { %v119_v49 = vpop.xlane.xlu0 %118 }
 0x18e   :  { %161 = vrcp.f32 %v119_v49  ;;  %v131_v53 = vand.u32 2147483648, %v119_v49  ;;  %v129_v55 = vand.u32 2147483647, %v119_v49  ;;  %vm125_vm10 = vweird.f32 %v119_v49 }
 0x190   :  { %v132_v57 = vor.u32 1.1754944e-38, %v131_v53  ;;  %vm130_vm12 = vcmp.eq.f32.partialorder %v129_v55, 8.507059e+37 }
 0x194   :  { %v162_v50 = vpop.eup %161 }
 0x195   :  { %v121_v51 = vmul.f32 %v162_v50, %v119_v49  ;;  %vm126_vm9 = vweird.f32 %v162_v50 }
 0x196   :  { %vm127_vm11 = vmor %vm125_vm10, %vm126_vm9 }
 0x197   :  { %v122_v52 = vsub.f32 1.0, %v121_v51 }
 0x199   :  { %v123_v54 = vmul.f32 %v162_v50, %v122_v52 }
 0x19b   :  { %v124_v56 = vadd.f32 %v162_v50, %v123_v54 }
 0x19d   :  { %v128_v58 = vsel %vm127_vm11, %v162_v50, %v124_v56 }
 0x19e   :  { %v133_v59 = vsel %vm130_vm12, %v132_v57, %v128_v58 }
 0x19f   :  { %v134_v60 = vmul.f32 %v160_v47, %v133_v59 }
 0x1a1   :  { %135 = vst.msk [vmem:[#allocation7] sm:$0xff] %vm110_vm8, %v134_v60 }
 0x1a2   :  { %146 = dma.vmem_to_hbm [thread:$0]  %s142_s1, 128, %s144_s23, [#allocation4]  }
 0x1a3   :  { %239 = dma.done.wait [#allocation4], 128  }
 0x1a4   :  { %240 = vsyncadd [#allocation4], 4294967168 }
 0x1a5   :  { %151 = vsyncpa [#allocation3], 1 }
 0x1a6   :  { %152 = vsyncpa [#allocation6], 1 }
 0x1a7   :  { %153 = vsyncpa [#allocation4], 1 }

</bundles_post_ra>
